<compile_context>
chip_gen: v7x
topology: tpu7x:2x2x1
jax: 0.10.0
libtpu: 0.0.40
codegen_flags: <defaults>
</compile_context>

<pallas_src>
import jax
import jax.numpy as jnp
from jax import lax
from jax.experimental import pallas as pl
from jax.experimental.pallas import tpu as pltpu


def _round_up(x, m):
    return (x + m - 1) // m * m


def _cdiv(a, b):
    return -(-a // b)


def _vmem_capacity_bytes():
    """Physical VMEM capacity of the local TPU (conservative fallback)."""
    try:
        info = pltpu.get_tpu_info()
        cap = getattr(info, "vmem_capacity_bytes", None)
        if cap:
            return int(cap)
    except Exception:
        pass
    return 64 * 1024 * 1024  # v7x-sized fallback


def _vmem_need(tb, tk, d_model, x_it, w_it, out_it):
    """Conservative per-step VMEM footprint: double-buffered tiles + f32
    accumulator + the compiler's f32 pre/acts temporaries."""
    tiles = 2 * (tb * d_model * x_it        # x tile
                 + d_model * tk * w_it      # W_enc tile
                 + tk * d_model * w_it      # W_dec tile
                 + 2 * tk * 4               # stacked [b_enc; threshold] tile (f32)
                 + d_model * 4              # b_dec (f32)
                 + tb * d_model * out_it)   # output tile
    return tiles + tb * d_model * 4 + 3 * tb * tk * 4


def jumprelu_sae_forward(x, w_enc, b_enc, threshold, w_dec, b_dec, *,
                         tb=None, tk=None, weight_dtype=jnp.bfloat16,
                         vmem_limit_bytes=None):
    """x: [N, d_model] -> recon: [N, d_model] (JumpReLU SAE forward)."""
    n, d_model = x.shape
    d_sae = w_enc.shape[1]
    out_dtype = x.dtype

    # One-time cast of the streamed operands (MXU is bf16-native on all gens).
    if weight_dtype is not None:
        w_enc = w_enc.astype(weight_dtype)
        w_dec = w_dec.astype(weight_dtype)
        x = x.astype(weight_dtype)

    # Biases / threshold stay f32; fold b_enc & threshold into one array.
    bt = jnp.stack([b_enc, threshold]).astype(jnp.float32)        # (2, d_sae)
    b_dec2 = b_dec.reshape(1, d_model).astype(jnp.float32)        # (1, d_model)

    x_it = jnp.dtype(x.dtype).itemsize
    w_it = jnp.dtype(w_enc.dtype).itemsize
    out_it = jnp.dtype(out_dtype).itemsize

    cap = _vmem_capacity_bytes()

    # d_sae tile: full extent if small, else 512 (lane-aligned, >= 256).
    if tk is None:
        tk = d_sae if d_sae <= 512 else 512

    # Token tile: the arithmetic-intensity knob.  Size from physical VMEM,
    # then shrink only if the accounted need overflows the budget.
    if tb is None:
        budget = int(cap * 0.7)
        tb = 1024 if cap >= 96 * 1024 * 1024 else 512
        # keep >= 2 parallel tiles when there is enough work (2 TCs on v7x)
        if n >= 512 and n <= tb:
            tb = _round_up((n + 1) // 2, 8)
        tb = min(tb, _round_up(n, 8))
        while tb > 64 and _vmem_need(tb, tk, d_model, x_it, w_it, out_it) > budget:
            tb = max(8, (tb // 2) // 8 * 8)
    if tb >= n:
        tb = n  # single full-extent token tile (always layout-legal)

    grid = (_cdiv(n, tb), _cdiv(d_sae, tk))
    ragged_k = (d_sae % tk) != 0

    need = _vmem_need(tb, tk, d_model, x_it, w_it, out_it)
    if vmem_limit_bytes is None:
        vmem_limit_bytes = min(max(32 * 1024 * 1024, int(need * 1.25)),
                               max(cap - 4 * 1024 * 1024, 32 * 1024 * 1024))

    # Advisory cost estimate for XLA's scheduler.
    flops = 4 * n * d_model * d_sae                 # two matmuls, 2 flops/MAC
    bytes_accessed = (grid[0] * 2 * d_model * d_sae * w_it   # streamed weights
                      + n * d_model * (x_it + out_it)        # x in + recon out
                      + (2 * d_sae + d_model) * 4)           # biases/threshold
    cost = pl.CostEstimate(flops=flops, transcendentals=0,
                           bytes_accessed=bytes_accessed)

    def sae_kernel(x_ref, w_enc_ref, bt_ref, w_dec_ref, b_dec_ref, o_ref,
                   acc_ref):
        k = pl.program_id(1)

        @pl.when(k == 0)
        def _():
            acc_ref[...] = jnp.zeros_like(acc_ref)

        # encode this d_sae slice: pre = x @ W_enc[:, k-tile] + b_enc[k-tile]
        pre = jnp.dot(x_ref[...], w_enc_ref[...],
                      preferred_element_type=jnp.float32)           # [tb, tk]
        bt_tile = bt_ref[...].astype(jnp.float32)                   # [2, tk]
        pre = pre + bt_tile[0:1, :]
        gate = pre > bt_tile[1:2, :]

        w_dec_tile = w_dec_ref[...]
        if ragged_k:
            # Mask the out-of-range tail features of the (partial) last k
            # tile: their W_enc/W_dec/b_enc/threshold values are undefined
            # edge padding.
            feat0 = k * tk
            lane = lax.broadcasted_iota(jnp.int32, (1, tk), 1)
            gate = jnp.logical_and(gate, (feat0 + lane) < d_sae)
            row = lax.broadcasted_iota(jnp.int32, (tk, 1), 0)
            w_dec_tile = jnp.where((feat0 + row) < d_sae, w_dec_tile,
                                   jnp.zeros_like(w_dec_tile))

        # JumpReLU (keep the relu: correct even for negative thresholds).
        acts = jnp.where(gate, jnp.maximum(pre, 0.0), 0.0)           # f32

        # decode contribution of this slice: acc += acts @ W_dec[k-tile, :]
        acc_ref[...] += jnp.dot(acts.astype(w_dec_tile.dtype), w_dec_tile,
                                preferred_element_type=jnp.float32)

        @pl.when(k == pl.num_programs(1) - 1)
        def _():
            o_ref[...] = (acc_ref[...] + b_dec_ref[...]).astype(o_ref.dtype)

    out = pl.pallas_call(
        sae_kernel,
        out_shape=jax.ShapeDtypeStruct((n, d_model), out_dtype),
        grid_spec=pltpu.PrefetchScalarGridSpec(
            num_scalar_prefetch=0,
            grid=grid,
            in_specs=[
                pl.BlockSpec((tb, d_model), lambda i, k: (i, 0)),   # x
                pl.BlockSpec((d_model, tk), lambda i, k: (0, k)),   # W_enc
                pl.BlockSpec((2, tk), lambda i, k: (0, k)),         # [b_enc; thr]
                pl.BlockSpec((tk, d_model), lambda i, k: (k, 0)),   # W_dec
                pl.BlockSpec((1, d_model), lambda i, k: (0, 0)),    # b_dec
            ],
            out_specs=pl.BlockSpec((tb, d_model), lambda i, k: (i, 0)),
            scratch_shapes=[pltpu.VMEM((tb, d_model), jnp.float32)],
        ),
        compiler_params=pltpu.CompilerParams(
            dimension_semantics=("parallel", "arbitrary"),
            vmem_limit_bytes=vmem_limit_bytes),
        cost_estimate=cost,
    )(x, w_enc, bt, w_dec, b_dec2)

    return out


if __name__ == "__main__":
    # Small deterministic test.  Ragged N (20 % 8 != 0) and ragged d_sae
    # (320 % 128 != 0) exercise the partial-block + in-kernel masking path;
    # tb/tk chosen so both grid axes have > 1 step (accumulation is tested).
    batch, d_model, d_sae = 20, 128, 320

    key = jax.random.PRNGKey(0)
    kx, kwe, kwd, kth, kbe, kbd = jax.random.split(key, 6)

    x = jax.random.normal(kx, (batch, d_model), dtype=jnp.float32)
    # Module __init__ zeros the params; use small random values instead so the
    # JumpReLU gate is actually exercised (forward semantics are identical).
    w_enc = jax.random.normal(kwe, (d_model, d_sae), dtype=jnp.float32) * 0.1
    w_dec = jax.random.normal(kwd, (d_sae, d_model), dtype=jnp.float32) * 0.1
    threshold = jax.random.normal(kth, (d_sae,), dtype=jnp.float32) * 0.05
    b_enc = jax.random.normal(kbe, (d_sae,), dtype=jnp.float32) * 0.1
    b_dec = jax.random.normal(kbd, (d_model,), dtype=jnp.float32) * 0.1

    # --- f32 path: small tiles, multi-step k, ragged N and d_sae ------------
    recon = jumprelu_sae_forward(x, w_enc, b_enc, threshold, w_dec, b_dec,
                                 tb=8, tk=128, weight_dtype=jnp.float32)
    recon = jax.block_until_ready(recon)

    pre = x @ w_enc + b_enc
    acts_ref = (pre > threshold) * jnp.maximum(pre, 0.0)
    recon_ref = acts_ref @ w_dec + b_dec
    assert recon.shape == (batch, d_model)
    err = float(jnp.max(jnp.abs(recon - recon_ref)))
    assert jnp.allclose(recon, recon_ref, atol=1e-3, rtol=1e-3), err

    # --- default (bf16-weight, auto-tiled) path ------------------------------
    recon_bf = jumprelu_sae_forward(x, w_enc, b_enc, threshold, w_dec, b_dec)
    recon_bf = jax.block_until_ready(recon_bf)

    # Reference mimicking the kernel's dtype choices (bf16 MXU operands,
    # f32 accumulation / gate math).
    xb = x.astype(jnp.bfloat16)
    web = w_enc.astype(jnp.bfloat16)
    wdb = w_dec.astype(jnp.bfloat16)
    pre_b = jnp.dot(xb, web, preferred_element_type=jnp.float32) + b_enc
    acts_b = jnp.where(pre_b > threshold, jnp.maximum(pre_b, 0.0), 0.0)
    recon_bf_ref = (jnp.dot(acts_b.astype(jnp.bfloat16), wdb,
                            preferred_element_type=jnp.float32)
                    + b_dec).astype(x.dtype)
    assert recon_bf.shape == (batch, d_model)
    err_b = float(jnp.max(jnp.abs(recon_bf - recon_bf_ref)))
    assert jnp.allclose(recon_bf, recon_bf_ref, atol=2e-2, rtol=2e-2), err_b

    print("KERNEL_OK")
</pallas_src>

<mosaic_0001>
module attributes {stable_mosaic.version = 11 : i64} {
  func.func @sae_kernel(%arg0: i32, %arg1: i32, %arg2: memref<8x128xf32, #tpu.memory_space<vmem>>, %arg3: memref<128x128xf32, #tpu.memory_space<vmem>>, %arg4: memref<2x128xf32, #tpu.memory_space<vmem>>, %arg5: memref<128x128xf32, #tpu.memory_space<vmem>>, %arg6: memref<1x128xf32, #tpu.memory_space<vmem>>, %arg7: memref<8x128xf32, #tpu.memory_space<vmem>>, %arg8: memref<8x128xf32, #tpu.memory_space<vmem>>) attributes {dimension_semantics = [#tpu.dimension_semantics<parallel>, #tpu.dimension_semantics<arbitrary>], iteration_bounds = array<i64: 3, 3>, scalar_prefetch = 0 : i64, scratch_operands = 1 : i64, tpu.core_type = #tpu.core_type<tc>, window_params = [{transform_indices = @transform_0, window_bounds = array<i64: 8, 128>}, {transform_indices = @transform_1, window_bounds = array<i64: 128, 128>}, {transform_indices = @transform_2, window_bounds = array<i64: 2, 128>}, {transform_indices = @transform_3, window_bounds = array<i64: 128, 128>}, {pipeline_mode = #tpu.pipeline_mode<synchronous>, transform_indices = @transform_4, window_bounds = array<i64: 1, 128>}, {transform_indices = @transform_5, window_bounds = array<i64: 8, 128>}]} {
    %c0_i32 = arith.constant 0 : i32
    %0 = arith.cmpi eq, %arg1, %c0_i32 : i32
    %1 = arith.extui %0 : i1 to i32
    %c0_i32_0 = arith.constant 0 : i32
    %2 = arith.cmpi ne, %1, %c0_i32_0 : i32
    scf.if %2 {
      %cst_18 = arith.constant 0.000000e+00 : f32
      %42 = vector.broadcast %cst_18 : f32 to vector<8x128xf32>
      %c0_19 = arith.constant 0 : index
      %c0_20 = arith.constant 0 : index
      %43 = vector.load %arg8[%c0_19, %c0_20] : memref<8x128xf32, #tpu.memory_space<vmem>>, vector<8x128xf32>
      tpu.vector_store %arg8[%c0_19, %c0_20], %42 {strides = array<i32>} : memref<8x128xf32, #tpu.memory_space<vmem>>, vector<8x128xf32>,
    } else {
    }
    %c0 = arith.constant 0 : index
    %c0_1 = arith.constant 0 : index
    %3 = vector.load %arg2[%c0, %c0_1] : memref<8x128xf32, #tpu.memory_space<vmem>>, vector<8x128xf32>
    %c0_2 = arith.constant 0 : index
    %c0_3 = arith.constant 0 : index
    %4 = vector.load %arg3[%c0_2, %c0_3] : memref<128x128xf32, #tpu.memory_space<vmem>>, vector<128x128xf32>
    %cst = arith.constant dense<0.000000e+00> : vector<8x128xf32>
    %5 = tpu.matmul %3, %4, %cst {dimension_numbers = #tpu.dot_dimension_numbers<[1], [0], [0], [1], [0, 0, 1, 1], [], []>} : vector<8x128xf32>, vector<128x128xf32>, vector<8x128xf32> -> vector<8x128xf32>
    %c0_4 = arith.constant 0 : index
    %c0_5 = arith.constant 0 : index
    %6 = vector.load %arg4[%c0_4, %c0_5] : memref<2x128xf32, #tpu.memory_space<vmem>>, vector<2x128xf32>
    %7 = vector.extract_strided_slice %6 {offsets = [0, 0], sizes = [1, 128], strides = [1, 1]} : vector<2x128xf32> to vector<1x128xf32>
    %8 = vector.broadcast %7 : vector<1x128xf32> to vector<8x128xf32>
    %9 = arith.addf %5, %8 : vector<8x128xf32>
    %10 = vector.extract_strided_slice %6 {offsets = [1, 0], sizes = [1, 128], strides = [1, 1]} : vector<2x128xf32> to vector<1x128xf32>
    %11 = vector.broadcast %10 : vector<1x128xf32> to vector<8x128xf32>
    %12 = arith.cmpf ogt, %9, %11 : vector<8x128xf32>
    %c0_6 = arith.constant 0 : index
    %c0_7 = arith.constant 0 : index
    %13 = vector.load %arg5[%c0_6, %c0_7] : memref<128x128xf32, #tpu.memory_space<vmem>>, vector<128x128xf32>
    %c128_i32 = arith.constant 128 : i32
    %14 = arith.muli %arg1, %c128_i32 : i32
    %15 = tpu.iota {dimensions = array<i32: 1>} : vector<1x128xi32>
    %16 = vector.broadcast %14 : i32 to vector<1x128xi32>
    %17 = arith.addi %16, %15 : vector<1x128xi32>
    %c320_i32 = arith.constant 320 : i32
    %18 = vector.broadcast %c320_i32 : i32 to vector<1x128xi32>
    %19 = arith.cmpi slt, %17, %18 : vector<1x128xi32>
    %20 = vector.broadcast %19 : vector<1x128xi1> to vector<8x128xi1>
    %21 = arith.andi %12, %20 : vector<8x128xi1>
    %22 = tpu.iota {dimensions = array<i32: 0>} : vector<128x1xi32>
    %23 = vector.broadcast %14 : i32 to vector<128x1xi32>
    %24 = arith.addi %23, %22 : vector<128x1xi32>
    %c320_i32_8 = arith.constant 320 : i32
    %25 = vector.broadcast %c320_i32_8 : i32 to vector<128x1xi32>
    %26 = arith.cmpi slt, %24, %25 : vector<128x1xi32>
    %cst_9 = arith.constant 0.000000e+00 : f32
    %27 = vector.broadcast %cst_9 : f32 to vector<128x128xf32>
    %28 = vector.shape_cast %26 : vector<128x1xi1> to vector<128x1xi1>
    %29 = vector.broadcast %28 : vector<128x1xi1> to vector<128x128xi1>
    %30 = arith.select %29, %13, %27 : vector<128x128xi1>, vector<128x128xf32>
    %cst_10 = arith.constant 0.000000e+00 : f32
    %31 = vector.broadcast %cst_10 : f32 to vector<8x128xf32>
    %32 = arith.maximumf %9, %31 : vector<8x128xf32>
    %cst_11 = arith.constant 0.000000e+00 : f32
    %33 = vector.broadcast %cst_11 : f32 to vector<8x128xf32>
    %34 = arith.select %21, %32, %33 : vector<8x128xi1>, vector<8x128xf32>
    %c0_12 = arith.constant 0 : index
    %c0_13 = arith.constant 0 : index
    %35 = vector.load %arg8[%c0_12, %c0_13] : memref<8x128xf32, #tpu.memory_space<vmem>>, vector<8x128xf32>
    %cst_14 = arith.constant dense<0.000000e+00> : vector<8x128xf32>
    %36 = tpu.matmul %34, %30, %cst_14 {dimension_numbers = #tpu.dot_dimension_numbers<[1], [0], [0], [1], [0, 0, 1, 1], [], []>} : vector<8x128xf32>, vector<128x128xf32>, vector<8x128xf32> -> vector<8x128xf32>
    %37 = arith.addf %35, %36 : vector<8x128xf32>
    %c0_15 = arith.constant 0 : index
    %c0_16 = arith.constant 0 : index
    %38 = vector.load %arg8[%c0_15, %c0_16] : memref<8x128xf32, #tpu.memory_space<vmem>>, vector<8x128xf32>
    tpu.vector_store %arg8[%c0_15, %c0_16], %37 {strides = array<i32>} : memref<8x128xf32, #tpu.memory_space<vmem>>, vector<8x128xf32>,
    %c2_i32 = arith.constant 2 : i32
    %39 = arith.cmpi eq, %arg1, %c2_i32 : i32
    %40 = arith.extui %39 : i1 to i32
    %c0_i32_17 = arith.constant 0 : i32
    %41 = arith.cmpi ne, %40, %c0_i32_17 : i32
    scf.if %41 {
      %c0_18 = arith.constant 0 : index
      %c0_19 = arith.constant 0 : index
      %42 = vector.load %arg8[%c0_18, %c0_19] : memref<8x128xf32, #tpu.memory_space<vmem>>, vector<8x128xf32>
      %c0_20 = arith.constant 0 : index
      %c0_21 = arith.constant 0 : index
      %43 = vector.load %arg6[%c0_20, %c0_21] : memref<1x128xf32, #tpu.memory_space<vmem>>, vector<1x128xf32>
      %44 = vector.broadcast %43 : vector<1x128xf32> to vector<8x128xf32>
      %45 = arith.addf %42, %44 : vector<8x128xf32>
      %c0_22 = arith.constant 0 : index
      %c0_23 = arith.constant 0 : index
      %46 = vector.load %arg7[%c0_22, %c0_23] : memref<8x128xf32, #tpu.memory_space<vmem>>, vector<8x128xf32>
      tpu.vector_store %arg7[%c0_22, %c0_23], %45 {strides = array<i32>} : memref<8x128xf32, #tpu.memory_space<vmem>>, vector<8x128xf32>,
    } else {
    }
    return
  }
  func.func @transform_0(%arg0: i32, %arg1: i32) -> (i32, i32) {
    %c0_i32 = arith.constant 0 : i32
    %c0_i32_0 = arith.constant 0 : i32
    return %arg0, %c0_i32 : i32, i32
  }
  func.func @transform_1(%arg0: i32, %arg1: i32) -> (i32, i32) {
    %c0_i32 = arith.constant 0 : i32
    %c0_i32_0 = arith.constant 0 : i32
    return %c0_i32, %arg1 : i32, i32
  }
  func.func @transform_2(%arg0: i32, %arg1: i32) -> (i32, i32) {
    %c0_i32 = arith.constant 0 : i32
    %c0_i32_0 = arith.constant 0 : i32
    return %c0_i32, %arg1 : i32, i32
  }
  func.func @transform_3(%arg0: i32, %arg1: i32) -> (i32, i32) {
    %c0_i32 = arith.constant 0 : i32
    %c0_i32_0 = arith.constant 0 : i32
    return %arg1, %c0_i32 : i32, i32
  }
  func.func @transform_4(%arg0: i32, %arg1: i32) -> (i32, i32) {
    %c0_i32 = arith.constant 0 : i32
    %c0_i32_0 = arith.constant 0 : i32
    %c0_i32_1 = arith.constant 0 : i32
    return %c0_i32, %c0_i32_0 : i32, i32
  }
  func.func @transform_5(%arg0: i32, %arg1: i32) -> (i32, i32) {
    %c0_i32 = arith.constant 0 : i32
    %c0_i32_0 = arith.constant 0 : i32
    return %arg0, %c0_i32 : i32, i32
  }
}

</mosaic_0001>

<bundles_post_ra>
// kernel: tpu_custom_call.1
= control target key start
LH: loop header
LB: loop body
LE: loop exit
PB: predicated region body
PF: predicated region fallthrough
CT: control target
= control target key end

     0   :  { %s1588_s0 = inlined_call_operand.vmem [shape: f32[20,128], index: 0, kind: input, shape index: {}]   ;;  %s1589_s1 = inlined_call_operand.vmem [shape: f32[128,320], index: 1, kind: input, shape index: {}]   ;;  %s1590_s2 = inlined_call_operand.vmem [shape: f32[2,320], index: 2, kind: input, shape index: {}]   ;;  %s1591_s3 = inlined_call_operand.vmem [shape: f32[320,128], index: 3, kind: input, shape index: {}]   ;;  %s1592_s4 = inlined_call_operand.vmem [shape: f32[1,128], index: 4, kind: input, shape index: {}]   ;;  %s1593_s5 = inlined_call_operand.hbm [shape: f32[20,128], index: 5, kind: output, shape index: {}]  }
   0x1   :  { %1600 = sst [smem:[#allocation14_spill]] %s1589_s1 }
   0x2   :  { %10 = vsyncpa [#allocation5], 0 }
   0x3   :  { %12 = vsyncpa [#allocation5 + $0x1], 0  ;;  %s1280_s18 = smov 0   ;;  %s1282_s19 = smov 0  }
   0x4   :  { %s1284_s20 = smov 0   ;;  %s1286_s21 = smov 0  }
   0x5   :  { %s1288_s22 = smov 0   ;;  %s1290_s23 = smov 0  }
   0x6   :  { %s1292_s24 = smov 0   ;;  %s1294_s25 = smov 0  }
   0x7   :  { %s1296_s26 = smov 0   ;;  %s1298_s27 = smov 0  }
   0x8 LB: > { %1601 = sst [smem:[#allocation7_spill]] %s1223_s22  ;;  %s844_s28 = sadd.s32 4294967295, %s1243_s27   ;;  %s1243_s27 = sphi %s1298_s27, %s18_s27   ;;  %s1239_s26 = sphi %s1296_s26, %s1619_s26   ;;  %s1235_s25 = sphi %s1294_s25, %s1623_s25   ;;  %s1231_s24 = sphi %s1292_s24, %s1617_s24   ;;  %s1227_s23 = sphi %s1290_s23, %s1616_s23   ;;  %s1223_s22 = sphi %s1288_s22, %s1615_s22   ;;  %s1219_s21 = sphi %s1286_s21, %s1614_s21   ;;  %s1215_s20 = sphi %s1284_s20, %s1622_s20   ;;  %s1211_s19 = sphi %s1282_s19, %s1621_s19   ;;  %s1207_s18 = sphi %s1280_s18, %s1620_s18  }
   0x9   : > { %1602 = sst [smem:[#allocation8_spill]] %s1235_s25  ;;  %s845_s29 = sadd.s32 4294967294, %s1243_s27  }
   0xa   : > { %1603 = sst [smem:[#allocation9_spill]] %s1239_s26  ;;  %s27_s30 = sadd.s32 1, %s1235_s25 }
   0xb   : > { %s30_s6 = sadd.s32 1, %s1239_s26  ;;  %p28_p0 = scmp.ge.s32.totalorder %s27_s30, 3 }
   0xc   : > { %s63_s7 = sadd.s32 1, %s1223_s22  ;;  %p70_p1 = scmp.ne.s32.totalorder %s1223_s22, %s1219_s21 }
   0xd   : > { %p71_p2 = scmp.eq.s32.totalorder %s1243_s27, 0  ;;  %s1625_s30 = smov (%p28_p0, %s27_s30), 0 }
   0xe   : > { %1604 = sst [smem:[#allocation10_spill]] %s1625_s30  ;;  %s1627_s6 = smov (!%p28_p0, %s30_s6), %s1239_s26 }
   0xf   : > { %s60_s8 = ssub.s32 %s1235_s25, %s1625_s30  ;;  %p1343_p3 = por %p71_p2, %p70_p1 }
  0x10   : > { %p32_p4 = scmp.ge.s32.totalorder %s1627_s6, 3  ;;  %p61_p5 = scmp.eq.s32.totalorder %s60_s8, 0 }
  0x11   : > { %s162_s10 = sadd.s32 1, %s1215_s20  ;;  %p172_p6 = scmp.ne.s32.totalorder %s1215_s20, %s1211_s19 }
  0x12   : > { %s1629_s6 = smov (%p32_p4, %s1627_s6), 0  ;;  %p173_p7 = scmp.eq.s32.totalorder %s844_s28, 8 }
  0x13   : > { %1606 = sst [smem:[#allocation11_spill]] %s1629_s6  ;;  %s159_s12 = ssub.s32 %s1239_s26, %s1629_s6 }
  0x14   : > { %s1353_s11 = scalar_select %p61_p5, %s1223_s22, %s63_s7  }
  0x15   : > { %p160_p8 = scmp.eq.s32.totalorder %s159_s12, 0  ;;  %p178_p9 = scmp.ne.s32.totalorder %s1211_s19, %s1207_s18 }
  0x16   : > { %1607 = sst [smem:[#allocation12_spill]] %s1353_s11  ;;  %p1359_p10 = por %p173_p7, %p172_p6 }
  0x17   : > { %p179_p11 = scmp.eq.s32.totalorder %s845_s29, 8  ;;  %p847_p13 = scmp.ge.s32.totalorder %s1243_s27, 9 }
  0x18   : > { %s1364_s14 = scalar_select %p160_p8, %s1215_s20, %s162_s10  }
  0x19   : > { %p1366_p12 = por %p179_p11, %p178_p9  ;;  %198 = sbr.rel (%p847_p13) target bundleno = 50 (0x32), region = 20 }
  0x1a   : > { %1609 = sst [smem:[#allocation13_spill]] %s1364_s14 }
  0x20   : > { %208 = sbr.rel (!%p1343_p3) target bundleno = 50 (0x32), region = 28  ;;  %s210_s16 = sand.u32 (%p1343_p3), 1, %s1223_s22  }
  0x21   : > { %s849_s17 = sshll.u32 (%p1343_p3), %s1235_s25, 3  ;;  %s848_s28 = sshll.u32 (%p1343_p3), %s210_s16, 7 }
  0x22   : > { %s1611_s1 = sld [smem:[#allocation14_spill]] (%p1343_p3)  ;;  %s212_s9 = scalar_lea.vmem (%p1343_p3), [#allocation3], %s848_s28 }
  0x28   : > { %s1378_s29 = scalar_lea.vmem %s1611_s1, %s849_s17 }
  0x29   : > { %v272_v0 = vld [vmem:[%s1378_s29] sm:$0xff]  ;;  %v274_v1 = vld [vmem:[%s1378_s29 + $0x18] sm:$0xff]  ;;  %v276_v2 = vld [vmem:[%s1378_s29 + $0x30] sm:$0xff] }
  0x2a   : > { %273 = vst [vmem:[%s212_s9] sm:$0xff] %v272_v0  ;;  %275 = vst [vmem:[%s212_s9 + $0x8] sm:$0xff] %v274_v1  ;;  %v278_v3 = vld [vmem:[%s1378_s29 + $0x48] sm:$0xff]  ;;  %v280_v4 = vld [vmem:[%s1378_s29 + $0x60] sm:$0xff] }
  0x2b   : > { %277 = vst [vmem:[%s212_s9 + $0x10] sm:$0xff] %v276_v2  ;;  %v282_v5 = vld [vmem:[%s1378_s29 + $0x78] sm:$0xff]  ;;  %279 = vst [vmem:[%s212_s9 + $0x18] sm:$0xff] %v278_v3  ;;  %v284_v6 = vld [vmem:[%s1378_s29 + $0x90] sm:$0xff] }
  0x2c   : > { %281 = vst [vmem:[%s212_s9 + $0x20] sm:$0xff] %v280_v4  ;;  %283 = vst [vmem:[%s212_s9 + $0x28] sm:$0xff] %v282_v5  ;;  %v286_v7 = vld [vmem:[%s1378_s29 + $0xa8] sm:$0xff]  ;;  %v288_v8 = vld [vmem:[%s1378_s29 + $0xc0] sm:$0xff] }
  0x2d   : > { %285 = vst [vmem:[%s212_s9 + $0x30] sm:$0xff] %v284_v6  ;;  %287 = vst [vmem:[%s212_s9 + $0x38] sm:$0xff] %v286_v7  ;;  %v290_v9 = vld [vmem:[%s1378_s29 + $0xd8] sm:$0xff]  ;;  %v292_v10 = vld [vmem:[%s1378_s29 + $0xf0] sm:$0xff] }
  0x2e   : > { %289 = vst [vmem:[%s212_s9 + $0x40] sm:$0xff] %v288_v8  ;;  %v294_v11 = vld [vmem:[%s1378_s29 + $0x108] sm:$0xff]  ;;  %291 = vst [vmem:[%s212_s9 + $0x48] sm:$0xff] %v290_v9  ;;  %v296_v12 = vld [vmem:[%s1378_s29 + $0x120] sm:$0xff] }
  0x2f   : > { %293 = vst [vmem:[%s212_s9 + $0x50] sm:$0xff] %v292_v10  ;;  %295 = vst [vmem:[%s212_s9 + $0x58] sm:$0xff] %v294_v11  ;;  %v298_v13 = vld [vmem:[%s1378_s29 + $0x138] sm:$0xff]  ;;  %v300_v14 = vld [vmem:[%s1378_s29 + $0x150] sm:$0xff] }
  0x30   : > { %297 = vst [vmem:[%s212_s9 + $0x60] sm:$0xff] %v296_v12  ;;  %299 = vst [vmem:[%s212_s9 + $0x68] sm:$0xff] %v298_v13  ;;  %v302_v15 = vld [vmem:[%s1378_s29 + $0x168] sm:$0xff] }
  0x31   : > { %301 = vst [vmem:[%s212_s9 + $0x70] sm:$0xff] %v300_v14  ;;  %303 = vst [vmem:[%s212_s9 + $0x78] sm:$0xff] %v302_v15 }
  0x32 PF: > { %p850_p0 = scmp.ge.s32.totalorder %s1243_s27, 1  ;;  %p332_p1 = scmp.lt.s32.totalorder %s1243_s27, 10 }
  0x34   : > { %p333_p2 = pnand %p850_p0, %p332_p1 }
  0x35   : > { %s339_s10 = sand.u32 (!%p333_p2), 1, %s1219_s21   ;;  %s1597_s12 = sand.u32 (!%p333_p2), 1, %s1211_s19  }
  0x36   : > { %336 = sbr.rel (%p333_p2) target bundleno = 574 (0x23e), region = 74  ;;  %s851_s16 = sshll.u32 (!%p333_p2), %s339_s10, 7 }
  0x37   : > { %s1402_s17 = sshll.u32 (!%p333_p2), %s1597_s12, 3  ;;  %p383_p3 = scmp.lt.s32.totalorder (!%p333_p2), %s1231_s24, 2 }
  0x38   : > { %p387_p4 = scmp.lt.s32.totalorder (!%p333_p2), %s1227_s23, 2  ;;  %s855_s28 = sshll.u32 (!%p333_p2), %s1227_s23, 4 }
  0x39   : > { %p396_p5 = scmp.lt.s32.totalorder (!%p333_p2), %s855_s28, 39  ;;  %s382_s14 = scalar_lea.vmem (!%p333_p2), [#allocation4], %s1402_s17 }
  0x3a   : > { %p857_p6 = scmp.ne.s32.totalorder (!%p333_p2), %s1227_s23, 0 }
  0x3d   : > { %s384_s7 = scalar_select %p383_p3, %s1231_s24, 2 }
  0x3e   : > { %s388_s8 = scalar_select %p387_p4, %s1227_s23, 2 }
  0x3f   : > { %s853_s29 = sshll.u32 %s384_s7, 3  ;;  %s1631_s28 = smov (!%p396_p5, %s855_s28), 39  ;;  %v1245_v16 = vmov (!%p857_p6), 0.0  }
  0x40   : > { %s1412_s6 = scalar_lea.vmem %s1588_s0, %s853_s29  ;;  %s854_s30 = sshll.u32 %s388_s8, 1  ;;  %409 = vst [vmem:[#allocation2] sm:$0xff] (!%p857_p6), %v1245_v16 }
  0x41   : > { %s1417_s10 = scalar_lea.vmem %s1590_s2, %s854_s30  ;;  %s856_s12 = sshll.u32 %s1631_s28, 3 }
  0x42   : > { %s1422_s22 = scalar_lea.vmem %s1591_s3, %s856_s12  ;;  %s1424_s7 = scalar_lea.vmem [#allocation3], %s851_s16 }
  0x43   : > { %408 = sbr.rel (%p857_p6) target bundleno = 74 (0x4a), region = 82 }
  0x4a PF: > { %v411_v17 = vld [vmem:[%s1424_s7] sm:$0xff]  ;;  %v412_v18 = vld [vmem:[%s1424_s7 + $0x8] sm:$0xff]  ;;  %v413_v19 = vld [vmem:[%s1424_s7 + $0x10] sm:$0xff]  ;;  %v428_v20 = vlaneseq  ;;  %v1246_v21 = vmov 0.0|0.0   ;;  %vm1247_vm0 = vmmov 0   ;;  %v1248_v24 = vmov 0.0  }
  0x4b   : > { %986 = vmatprep.subr.bf16.mxu0 %v1246_v21  ;;  %v987_v22 = vpack.c.bf16 %v412_v18, %v411_v17  ;;  %v414_v23 = vld [vmem:[%s1424_s7 + $0x18] sm:$0xff]  ;;  %948 = vmatprep.mubr.msk.f32.mxu0 %vm1247_vm0, %v1248_v24  ;;  %s858_s1 = sshll.u32 %s1227_s23, 7  ;;  %v415_v28 = vld [vmem:[%s1424_s7 + $0x20] sm:$0xff]  ;;  %v416_v29 = vld [vmem:[%s1424_s7 + $0x28] sm:$0xff]  ;;  %p876_p7 = scmp.ne.s32.totalorder %s1227_s23, 2 }
  0x4c   : > { %1010 = vmatprep.subr.bf16.mxu1 %v1246_v21  ;;  %v1436_v25 = vshrl.u32 %v428_v20, 7  ;;  %v1438_v26 = vstv %s858_s1  ;;  %983 = vmatprep.mubr.msk.f32.mxu1 %vm1247_vm0, %v1248_v24  ;;  %v990_v27 = vpack.c.bf16 %v414_v23, %v413_v19  ;;  %v507_v32 = vld [vmem:[%s1422_s22] sm:$0xff]  ;;  %v508_v36 = vld [vmem:[%s1422_s22 + $0x8] sm:$0xff]  ;;  %v993_v39 = vpack.c.bf16 %v416_v29, %v415_v28  ;;  %v509_v41 = vld [vmem:[%s1422_s22 + $0x10] sm:$0xff] }
  0x4d   : > { %988 = vmatpush3.bf16.msra.mxu0 %v987_v22  ;;  %v1011_v40 = vpack.c.bf16 %v508_v36, %v507_v32  ;;  %v510_v42 = vld [vmem:[%s1422_s22 + $0x18] sm:$0xff]  ;;  %v418_v46 = vld [vmem:[%s1424_s7 + $0x38] sm:$0xff]  ;;  %v512_v54 = vld [vmem:[%s1422_s22 + $0x28] sm:$0xff] }
  0x4e   : > { %989 = vmatprep.subr.bf16.mxu0 %v1246_v21  ;;  %v534_v30 = vadd.s32 8, %v1436_v25  ;;  %v549_v31 = vadd.s32 %v1438_v26, %v1436_v25  ;;  %v535_v33 = vadd.s32 16, %v1436_v25  ;;  %v536_v34 = vadd.s32 24, %v1436_v25  ;;  %v417_v45 = vld [vmem:[%s1424_s7 + $0x30] sm:$0xff]  ;;  %v511_v53 = vld [vmem:[%s1422_s22 + $0x20] sm:$0xff]  ;;  %v419_v56 = vld [vmem:[%s1424_s7 + $0x40] sm:$0xff] }
  0x4f   : > { %v537_v35 = vadd.s32 32, %v1436_v25  ;;  %v538_v38 = vadd.s32 40, %v1436_v25  ;;  %v539_v49 = vadd.s32 48, %v1436_v25  ;;  %v540_v50 = vadd.s32 56, %v1436_v25  ;;  %v420_v57 = vld [vmem:[%s1424_s7 + $0x48] sm:$0xff]  ;;  %v514_v0 = vld [vmem:[%s1422_s22 + $0x38] sm:$0xff] }
  0x50   : > { %v550_v37 = vadd.s32 %v534_v30, %v1438_v26  ;;  %vm565_vm1 = vcmp.lt.s32.totalorder %v549_v31, 320  ;;  %v551_v43 = vadd.s32 %v535_v33, %v1438_v26  ;;  %v552_v44 = vadd.s32 %v536_v34, %v1438_v26  ;;  %v513_v63 = vld [vmem:[%s1422_s22 + $0x30] sm:$0xff]  ;;  %v421_v3 = vld [vmem:[%s1424_s7 + $0x50] sm:$0xff]  ;;  %v422_v4 = vld [vmem:[%s1424_s7 + $0x58] sm:$0xff] }
  0x51   : > { %991 = vmatpush3.bf16.msra.mxu0 %v990_v27  ;;  %v553_v47 = vadd.s32 %v537_v35, %v1438_v26  ;;  %v554_v48 = vadd.s32 %v538_v38, %v1438_v26  ;;  %v1015_v51 = vpack.c.bf16 %v510_v42, %v509_v41  ;;  %v996_v52 = vpack.c.bf16 %v418_v46, %v417_v45  ;;  %v515_v9 = vld [vmem:[%s1422_s22 + $0x40] sm:$0xff]  ;;  %v516_v10 = vld [vmem:[%s1422_s22 + $0x48] sm:$0xff]  ;;  %v424_v13 = vld [vmem:[%s1424_s7 + $0x68] sm:$0xff] }
  0x52   : > { %992 = vmatprep.subr.bf16.mxu0 %v1246_v21  ;;  %vm566_vm2 = vcmp.lt.s32.totalorder %v550_v37, 320  ;;  %vm567_vm4 = vcmp.lt.s32.totalorder %v551_v43, 320  ;;  %vm568_vm5 = vcmp.lt.s32.totalorder %v552_v44, 320  ;;  %v541_v55 = vadd.s32 64, %v1436_v25  ;;  %v423_v12 = vld [vmem:[%s1424_s7 + $0x60] sm:$0xff]  ;;  %v517_v19 = vld [vmem:[%s1422_s22 + $0x50] sm:$0xff] }
  0x53   : > { %vm1012_vm3 = vmpackc.low %vm566_vm2, %vm565_vm1  ;;  %vm569_vm7 = vcmp.lt.s32.totalorder %v553_v47, 320  ;;  %vm570_vm8 = vcmp.lt.s32.totalorder %v554_v48, 320  ;;  %v555_v58 = vadd.s32 %v539_v49, %v1438_v26  ;;  %v556_v59 = vadd.s32 %v540_v50, %v1438_v26  ;;  %v518_v22 = vld [vmem:[%s1422_s22 + $0x58] sm:$0xff]  ;;  %v426_v24 = vld [vmem:[%s1424_s7 + $0x78] sm:$0xff] }
  0x54   : > { %1013 = vmatpush3.bf16.msk.msra.mxu1 %vm1012_vm3, %v1011_v40  ;;  %vm1016_vm6 = vmpackc.low %vm568_vm5, %vm567_vm4  ;;  %v542_v60 = vadd.s32 72, %v1436_v25  ;;  %v1019_v61 = vpack.c.bf16 %v512_v54, %v511_v53  ;;  %v999_v62 = vpack.c.bf16 %v420_v57, %v419_v56  ;;  %v557_v1 = vadd.s32 %v541_v55, %v1438_v26  ;;  %v425_v23 = vld [vmem:[%s1424_s7 + $0x70] sm:$0xff]  ;;  %v519_v31 = vld [vmem:[%s1422_s22 + $0x60] sm:$0xff] }
  0x55   : > { %994 = vmatpush3.bf16.msra.mxu0 %v993_v39  ;;  %1014 = vmatprep.subr.bf16.mxu1 %v1246_v21  ;;  %vm1020_vm9 = vmpackc.low %vm570_vm8, %vm569_vm7  ;;  %v543_v2 = vadd.s32 80, %v1436_v25  ;;  %vm571_vm10 = vcmp.lt.s32.totalorder %v555_v58, 320  ;;  %vm572_vm11 = vcmp.lt.s32.totalorder %v556_v59, 320  ;;  %v544_v6 = vadd.s32 88, %v1436_v25  ;;  %v520_v32 = vld [vmem:[%s1422_s22 + $0x68] sm:$0xff]  ;;  %v410_v34 = vld [vmem:[%s1412_s6] sm:$0xff] }
  0x56   : > { %995 = vmatprep.subr.bf16.mxu0 %v1246_v21  ;;  %v558_v5 = vadd.s32 %v542_v60, %v1438_v26  ;;  %v1023_v7 = vpack.c.bf16 %v514_v0, %v513_v63  ;;  %v1002_v8 = vpack.c.bf16 %v422_v4, %v421_v3  ;;  %vm1024_vm12 = vmpackc.low %vm572_vm11, %vm571_vm10  ;;  %vm573_vm13 = vcmp.lt.s32.totalorder %v557_v1, 320  ;;  %v521_v39 = vld [vmem:[%s1422_s22 + $0x70] sm:$0xff]  ;;  %v522_v40 = vld [vmem:[%s1422_s22 + $0x78] sm:$0xff] }
  0x57   : > { %v545_v11 = vadd.s32 96, %v1436_v25  ;;  %v559_v14 = vadd.s32 %v543_v2, %v1438_v26  ;;  %v560_v15 = vadd.s32 %v544_v6, %v1438_v26  ;;  %v546_v16 = vadd.s32 104, %v1436_v25 }
  0x58   : > { %1017 = vmatpush3.bf16.msk.msra.mxu1 %vm1016_vm6, %v1015_v51  ;;  %vm574_vm14 = vcmp.lt.s32.totalorder %v558_v5, 320  ;;  %v1027_v17 = vpack.c.bf16 %v516_v10, %v515_v9  ;;  %v1005_v18 = vpack.c.bf16 %v424_v13, %v423_v12  ;;  %v1031_v29 = vpack.c.bf16 %v518_v22, %v517_v19 }
  0x59   : > { %997 = vmatpush3.bf16.msra.mxu0 %v996_v52  ;;  %1018 = vmatprep.subr.bf16.mxu1 %v1246_v21  ;;  %vm1028_vm15 = vmpackc.low %vm574_vm14, %vm573_vm13  ;;  %vm575_vm0 = vcmp.lt.s32.totalorder %v559_v14, 320  ;;  %vm576_vm1 = vcmp.lt.s32.totalorder %v560_v15, 320  ;;  %v561_v27 = vadd.s32 %v545_v11, %v1438_v26  ;;  %v562_v28 = vadd.s32 %v546_v16, %v1438_v26  ;;  %v631_v52 = vld [vmem:[#allocation2] sm:$0xff] }
  0x5a   : > { %998 = vmatprep.subr.bf16.mxu0 %v1246_v21  ;;  %v1008_v30 = vpack.c.bf16 %v426_v24, %v425_v23  ;;  %vm1032_vm2 = vmpackc.low %vm576_vm1, %vm575_vm0  ;;  %v1035_v33 = vpack.c.bf16 %v520_v32, %v519_v31  ;;  %v547_v35 = vadd.s32 112, %v1436_v25  ;;  %v548_v36 = vadd.s32 120, %v1436_v25 }
  0x5b   : > { %vm577_vm3 = vcmp.lt.s32.totalorder %v561_v27, 320  ;;  %vm578_vm4 = vcmp.lt.s32.totalorder %v562_v28, 320  ;;  %v1039_v41 = vpack.c.bf16 %v522_v40, %v521_v39  ;;  %v430_v42 = vsub.s32 0, %v1436_v25 }
  0x5c   : > { %1021 = vmatpush3.bf16.msk.msra.mxu1 %vm1020_vm9, %v1019_v61  ;;  %vm1036_vm5 = vmpackc.low %vm578_vm4, %vm577_vm3  ;;  %v563_v37 = vadd.s32 %v547_v35, %v1438_v26  ;;  %v564_v38 = vadd.s32 %v548_v36, %v1438_v26  ;;  %v525_v43 = vand.u32 127, %v428_v20  ;;  %v504_v44 = vsub.s32 1, %v1436_v25  ;;  %v877_v25 = vld [vmem:[%s1592_s4] ss:$0 sm:$0xff] (!%p876_p7) }
  0x5d   : > { %1000 = vmatpush3.bf16.msra.mxu0 %v999_v62  ;;  %1022 = vmatprep.subr.bf16.mxu1 %v1246_v21 }
  0x5e   : > { %1001 = vmatprep.subr.bf16.mxu0 %v1246_v21  ;;  %vm579_vm6 = vcmp.lt.s32.totalorder %v563_v37, 320  ;;  %vm580_vm7 = vcmp.lt.s32.totalorder %v564_v38, 320  ;;  %v527_v46 = vadd.s32 %v1438_v26, %v525_v43 }
  0x5f   : > { %vm1040_vm8 = vmpackc.low %vm580_vm7, %vm579_vm6 }
  0x60   : > { %1025 = vmatpush3.bf16.msk.msra.mxu1 %vm1024_vm12, %v1023_v7  ;;  %vm528_vm9 = vcmp.lt.s32.totalorder %v527_v46, 320 }
  0x61   : > { %1003 = vmatpush3.bf16.msra.mxu0 %v1002_v8  ;;  %1026 = vmatprep.subr.bf16.mxu1 %v1246_v21 }
  0x62   : > { %1004 = vmatprep.subr.bf16.mxu0 %v1246_v21 }
  0x64   : > { %1029 = vmatpush3.bf16.msk.msra.mxu1 %vm1028_vm15, %v1027_v17 }
  0x65   : > { %1006 = vmatpush3.bf16.msra.mxu0 %v1005_v18  ;;  %1030 = vmatprep.subr.bf16.mxu1 %v1246_v21 }
  0x66   : > { %1007 = vmatprep.subr.bf16.mxu0 %v1246_v21 }
  0x68   : > { %1033 = vmatpush3.bf16.msk.msra.mxu1 %vm1032_vm2, %v1031_v29 }
  0x69   : > { %1009 = vmatpush3.bf16.msra.mxu0 %v1008_v30  ;;  %1034 = vmatprep.subr.bf16.mxu1 %v1246_v21 }
  0x6c   : > { %949 = vmatmul.mubr.f32.vlgmr.msra.gmra.mrb[0].mxu0 %v410_v34  ;;  %1037 = vmatpush3.bf16.msk.msra.mxu1 %vm1036_vm5, %v1035_v33 }
  0x6d   : > { %1038 = vmatprep.subr.bf16.mxu1 %v1246_v21  ;;  %v427_v21 = vld [vmem:[%s1417_s10] sm:$0x3] }
  0x6e   : > { %v431_v45 = vrot.slane %v427_v21, %v430_v42  ;;  %v505_v47 = vrot.slane %v427_v21, %v504_v44 }
  0x70   : > { %1041 = vmatpush3.bf16.msk.msra.mxu1 %vm1040_vm8, %v1039_v41 }
 0x13f   : > { %v498_v48 = vpop.f32.mrb[0].mxu0 }
 0x140   : > { %v499_v49 = vadd.f32 %v498_v48, %v431_v45  ;;  %v950_v50 = vpop.f32.mrb[1].mxu0 }
 0x142   : > { %vm506_vm10 = vcmp.gt.f32.partialorder %v499_v49, %v505_v47  ;;  %v629_v51 = vmax.f32 %v499_v49, 0.0 }
 0x143   : > { %vm531_vm11 = vmand %vm506_vm10, %vm528_vm9 }
 0x144   : > { %984 = vmatmul.mubr.msk.f32.vlgmr.msra.gmra.mrb[0].mxu1 %vm531_vm11, %v629_v51 }
 0x214   : > { %707 = sbr.rel (%p876_p7) target bundleno = 549 (0x225), region = 86 }
 0x217   : > { %v698_v53 = vpop.f32.mrb[0].mxu1 }
 0x218   : > { %v702_v54 = vadd.f32 %v698_v53, %v631_v52  ;;  %v985_v55 = vpop.f32.mrb[1].mxu1 }
 0x21a   : > { %703 = vst [vmem:[#allocation2] sm:$0xff] %v702_v54 }
 0x221   : > { %v708_v20 = vld [vmem:[#allocation2] sm:$0xff] }
 0x222   : > { %v716_v26 = vadd.f32 %v877_v25, %v708_v20 }
 0x224   : > { %717 = vst [vmem:[%s382_s14] sm:$0xff] %v716_v26 }
 0x225 PF: > { %s879_s26 = sshll.u32 %s1231_s24, 7  ;;  %s732_s11 = sshll.u32 %s382_s14, 4  ;;  %s733_s11 = int_to_ptr.vmem [resolvable:$true] %s732_s11 }
 0x226   : > { %s1531_s23 = scalar_lea.hbm %s1593_s5, %s879_s26  ;;  %s1612_s12 = sand.u32 1, %s1211_s19  }
 0x227   : > { %s719_s16 = scalar_lea.sflag [#allocation5], %s1612_s12  ;;  %s1133_s28 = scalar_lea.vmem %s733_s11, 128 }
 0x228   : > { %p1134_p8 = scmp.ne.s32.totalorder %s733_s11, %s1133_s28  ;;  %s1249_s8 = smov [#allocation4]  }
 0x229   : > { %s1137_s29 = sshll.u32 %s1249_s8, 4  ;;  %s1138_s29 = int_to_ptr.vmem [resolvable:$false] %s1137_s29 }
 0x22a   : > { %p1135_p9 = pnand %p1134_p8, %p1359_p10  ;;  %s1139_s9 = scalar_lea.vmem %s1138_s29, 256 }
 0x22b   : > { %p1140_p13 = scmp.lt.s32.totalorder %s733_s11, %s1138_s29  ;;  %p1141_p0 = scmp.lt.s32.totalorder %s1139_s9, %s1133_s28 }
 0x22c   : > { %p1136_p11 = pneg %p1135_p9 }
 0x22d   : > { %p1142_p1 = por %p1141_p0, %p1140_p13 }
 0x22f   : > { %p1143_p2 = pnand %p1142_p1, %p1136_p11 }
 0x231   : > { %1146 = shalt.err (!%p1143_p2)
}
 0x232   : > { %s1147_s24 = scalar_lea.hbm %s1531_s23, 128  ;;  %s1151_s21 = scalar_lea.hbm %s1593_s5, 384 }
 0x233   : > { %p1148_p3 = scmp.ne.s32.totalorder %s1531_s23, %s1147_s24  ;;  %p1152_p6 = scmp.lt.u32.totalorder %s1531_s23, %s1593_s5 }
 0x234   : > { %p1153_p7 = scmp.lt.u32.totalorder %s1151_s21, %s1147_s24  ;;  %p1155_p9 = scmp.lt.u32.totalorder %s1147_s24, %s1531_s23 }
 0x235   : > { %p1149_p4 = pnand %p1148_p3, %p1359_p10 }
 0x236   : > { %p1154_p8 = por %p1153_p7, %p1152_p6 }
 0x237   : > { %p1150_p5 = pneg %p1149_p4 }
 0x238   : > { %p1156_p11 = por %p1155_p9, %p1154_p8 }
 0x23a   : > { %p1157_p13 = pnand %p1156_p11, %p1150_p5 }
 0x23c   : > { %1160 = shalt.err (!%p1157_p13)
}
 0x23d   : > { %1042 = dma.vmem_to_hbm [thread:$0]  (%p1359_p10), %s733_s11, 128, %s1531_s23, %s719_s16  }
 0x23e PF: > { %p1048_p0 = scmp.ge.s32.totalorder %s1243_s27, 2  ;;  %s744_s1 = sand.u32 1, %s1207_s18  }
 0x23f   : > { %s745_s22 = scalar_lea.sflag [#allocation5], %s744_s1 }
 0x240   : > { %p1045_p1 = pnand %p1048_p0, %p1366_p12 }
 0x242   : > { %1202 = dma.done.wait (!%p1045_p1), %s745_s22, 128  }
 0x243   : > { %1204 = vsyncadd (!%p1045_p1), %s745_s22, 4294967168  ;;  %s18_s27 = sadd.s32 1, %s1243_s27   ;;  %s1613_s25 = sld [smem:[#allocation13_spill]] }
 0x244   : > { %p15_p2 = scmp.ge.s32.totalorder %s18_s27, 11   ;;  %s1614_s21 = sld [smem:[#allocation7_spill]] }
 0x245   : > { %s1615_s22 = sld [smem:[#allocation12_spill]]  ;;  %s1616_s23 = sld [smem:[#allocation8_spill]] }
 0x246   : > { %s1617_s24 = sld [smem:[#allocation9_spill]]  ;;  %s1618_s13 = sld [smem:[#allocation10_spill]] }
 0x247   : > { %s1619_s26 = sld [smem:[#allocation11_spill]]  ;;  %s1620_s18 = smov %s1211_s19 }
 0x248   : > { %s1621_s19 = smov %s1215_s20  ;;  %17 = sbr.rel (!%p15_p2) target bundleno = 8 (0x8), region = 135 }
 0x249   : > { %s1622_s20 = smov %s1613_s25 }
 0x24c   : > { %s1623_s25 = smov %s1618_s13 }
 0x24f   :  { %750 = vsyncpa [#allocation5], 1 }
 0x250   :  { %752 = vsyncpa [#allocation5 + $0x1], 1 }

</bundles_post_ra>
